<compile_context>
chip_gen: v5e
topology: v5e:2x2
jax: 0.10.0
libtpu: 0.0.40
codegen_flags: <defaults>
</compile_context>

<pallas_src>
import functools
import math

import jax
import jax.numpy as jnp
from jax.experimental import pallas as pl
from jax.experimental.pallas import tpu as pltpu

_LANES = 128
_SUBLANES = 8
_TILE_ELEMS = _LANES * _SUBLANES  # 1024 elements = one (8,128) vreg


def _round_up(v, m):
    return (v + m - 1) // m * m


def _dice_partial_kernel(x_ref, t_ref, inter_ref, denom_ref, *,
                         tr, rows_valid, masked):
    """Grid = (G, nj); j is the (arbitrary) reduction axis over feature tiles.

    x_ref / t_ref : (1, tr, 128) VMEM tiles in the input dtype.
    inter_ref     : (1, 8, 128) f32 running sum of x*t   (resident across j).
    denom_ref     : (1, 8, 128) f32 running sum of x*x + t*t.
    """
    j = pl.program_id(1)

    @pl.when(j == 0)
    def _():
        inter_ref[...] = jnp.zeros_like(inter_ref)
        denom_ref[...] = jnp.zeros_like(denom_ref)

    x = x_ref[0].astype(jnp.float32)  # (tr, 128); cast is free under the DMA
    t = t_ref[0].astype(jnp.float32)

    if masked:
        # The last j-block hangs past the valid rows of this chunk; those
        # sublanes contain unspecified data, so zero them before accumulating.
        row = jax.lax.broadcasted_iota(jnp.int32, (tr, _LANES), 0)
        keep = (j * tr + row) < rows_valid
        x = jnp.where(keep, x, 0.0)
        t = jnp.where(keep, t, 0.0)

    # Fold tr sublanes into a vreg-shaped (8,128) partial sum — pure VPU work
    # hidden under the HBM DMA.  The cheap cross-lane reduce is done in the
    # wrapper on (G, 8, 128) outputs.
    inter_ref[0] += (x * t).reshape(-1, _SUBLANES, _LANES).sum(axis=0)
    denom_ref[0] += (x * x + t * t).reshape(-1, _SUBLANES, _LANES).sum(axis=0)


def _partial_sums(x3, t3, *, tr):
    """x3, t3: (G, R, 128) with R % 8 == 0.  Returns per-chunk (inter, denom)."""
    g, r, _ = x3.shape
    tr = _round_up(max(int(tr), _SUBLANES), _SUBLANES)  # tr must be a mult. of 8
    tr = min(tr, r)                                     # both multiples of 8
    nj = pl.cdiv(r, tr)
    masked = (r % tr) != 0

    bytes_accessed = (x3.size * x3.dtype.itemsize
                      + t3.size * t3.dtype.itemsize
                      + 2 * g * _SUBLANES * _LANES * 4)

    inter, denom = pl.pallas_call(
        functools.partial(_dice_partial_kernel, tr=tr, rows_valid=r,
                          masked=masked),
        out_shape=(
            jax.ShapeDtypeStruct((g, _SUBLANES, _LANES), jnp.float32),
            jax.ShapeDtypeStruct((g, _SUBLANES, _LANES), jnp.float32),
        ),
        grid_spec=pltpu.PrefetchScalarGridSpec(
            num_scalar_prefetch=0,
            grid=(g, nj),
            in_specs=[
                pl.BlockSpec((1, tr, _LANES), lambda i, j: (i, j, 0)),
                pl.BlockSpec((1, tr, _LANES), lambda i, j: (i, j, 0)),
            ],
            out_specs=[
                pl.BlockSpec((1, _SUBLANES, _LANES), lambda i, j: (i, 0, 0)),
                pl.BlockSpec((1, _SUBLANES, _LANES), lambda i, j: (i, 0, 0)),
            ],
        ),
        compiler_params=pltpu.CompilerParams(
            # chunk/sample axis shards across v7x's 2 TensorCores; harmless on
            # single-TC v5e/v6e.  Reduction axis stays "arbitrary".
            dimension_semantics=("parallel", "arbitrary"),
            # 32 MiB scoped VMEM: default on v6e/v7x, raises v5e's 16 MiB so a
            # user-supplied larger tr still fits; well under v7x's 64 MiB phys.
            vmem_limit_bytes=32 * 1024 * 1024,
        ),
        cost_estimate=pl.CostEstimate(
            flops=6 * g * r * _LANES,
            transcendentals=0,
            bytes_accessed=bytes_accessed,
        ),
    )(x3, t3)

    return (jnp.sum(inter.reshape(g, -1), axis=1),
            jnp.sum(denom.reshape(g, -1), axis=1))


def _to_tiles(flat2d):
    """(G, L) -> (G, R, 128) with R % 8 == 0.

    Free (view-only) reshape when L % 1024 == 0; otherwise zero-pads the tail
    (zeros are sum-neutral) — the only case that costs an extra HBM copy.
    """
    g, l = flat2d.shape
    lp = _round_up(l, _TILE_ELEMS)
    if lp != l:
        flat2d = jnp.pad(flat2d, ((0, 0), (0, lp - l)))
    return flat2d.reshape(g, lp // _LANES, _LANES)


def dice_loss_pallas(x, target, *, smooth=100.0, reduce=True, tr=1024):
    """Pallas implementation of DiceLoss.forward.  Returns a scalar f32 loss."""
    if x.shape != target.shape:
        raise ValueError(
            f"Target size ({target.shape}) must be the same as input size ({x.shape})"
        )

    smooth = jnp.float32(smooth)

    if reduce:
        # dice_loss: per-sample dice, then mean over the batch.
        n = x.shape[0]
        f = math.prod(x.shape[1:])
        x3 = _to_tiles(x.reshape(n, f))
        t3 = _to_tiles(target.reshape(n, f))
        inter, denom = _partial_sums(x3, t3, tr=tr)        # each (n,)
        losses = 1.0 - (2.0 * inter + smooth) / (denom + smooth)
        return jnp.sum(losses) / n

    # dice_loss_batch: one dice over the whole tensor.  Split the flat axis
    # into 2 chunks when it divides cleanly so both v7x TensorCores work; the
    # partial sums are combined here before forming the loss.
    total = math.prod(x.shape)
    g = 2 if (total % (2 * _TILE_ELEMS) == 0) else 1
    x3 = _to_tiles(x.reshape(g, total // g))
    t3 = _to_tiles(target.reshape(g, total // g))
    inter, denom = _partial_sums(x3, t3, tr=tr)
    return 1.0 - (2.0 * jnp.sum(inter) + smooth) / (jnp.sum(denom) + smooth)


def _dice_loss_ref(x, target, *, smooth=100.0, reduce=True):
    """Pure-JAX reference mirroring the PyTorch module."""
    x = x.astype(jnp.float32)
    target = target.astype(jnp.float32)
    if reduce:
        n = x.shape[0]
        xf = x.reshape(n, -1)
        tf = target.reshape(n, -1)
        inter = jnp.sum(xf * tf, axis=1)
        loss = 1.0 - (2.0 * inter + smooth) / (
            jnp.sum(xf * xf, axis=1) + jnp.sum(tf * tf, axis=1) + smooth
        )
        return jnp.sum(loss) / n
    xf = x.reshape(-1)
    tf = target.reshape(-1)
    inter = jnp.sum(xf * tf)
    return 1.0 - (2.0 * inter + smooth) / (
        jnp.sum(xf * xf) + jnp.sum(tf * tf) + smooth
    )


if __name__ == "__main__":
    # DiceLoss has no learned parameters; smooth=100.0 is the module default.
    key = jax.random.PRNGKey(0)
    k1, k2, k3, k4, k5, k6 = jax.random.split(key, 6)

    # NCHW, small shapes: batch=2, channels=4, spatial=16x16 (F = 1024).
    x = jax.nn.sigmoid(jax.random.normal(k1, (2, 4, 16, 16), dtype=jnp.float32))
    t = (jax.random.uniform(k2, (2, 4, 16, 16)) > 0.5).astype(jnp.float32)

    loss = jax.block_until_ready(dice_loss_pallas(x, t, smooth=100.0, reduce=True))
    ref = _dice_loss_ref(x, t, smooth=100.0, reduce=True)
    assert jnp.allclose(loss, ref, rtol=1e-5, atol=1e-5), (loss, ref)

    # reduce=False (dice_loss_batch) path — also exercises the 2-chunk split.
    loss_b = jax.block_until_ready(dice_loss_pallas(x, t, smooth=100.0, reduce=False))
    ref_b = _dice_loss_ref(x, t, smooth=100.0, reduce=False)
    assert jnp.allclose(loss_b, ref_b, rtol=1e-5, atol=1e-5), (loss_b, ref_b)

    # Ragged feature count (F = 189): exercises the zero-pad fallback.
    xr = jax.nn.sigmoid(jax.random.normal(k3, (2, 3, 7, 9), dtype=jnp.float32))
    tr_ = (jax.random.uniform(k4, (2, 3, 7, 9)) > 0.5).astype(jnp.float32)
    loss_r = jax.block_until_ready(dice_loss_pallas(xr, tr_, reduce=True))
    ref_r = _dice_loss_ref(xr, tr_, reduce=True)
    assert jnp.allclose(loss_r, ref_r, rtol=1e-5, atol=1e-5), (loss_r, ref_r)

    # R not a multiple of the tile (R=24, tr=16): exercises in-kernel masking.
    xm = jax.nn.sigmoid(jax.random.normal(k5, (2, 3, 8, 128), dtype=jnp.float32))
    tm = (jax.random.uniform(k6, (2, 3, 8, 128)) > 0.5).astype(jnp.float32)
    loss_m = jax.block_until_ready(dice_loss_pallas(xm, tm, reduce=True, tr=16))
    ref_m = _dice_loss_ref(xm, tm, reduce=True)
    assert jnp.allclose(loss_m, ref_m, rtol=1e-5, atol=1e-5), (loss_m, ref_m)

    print("KERNEL_OK")
</pallas_src>

<mosaic_0001>
module attributes {stable_mosaic.version = 11 : i64} {
  func.func @_dice_partial_kernel(%arg0: i32, %arg1: i32, %arg2: memref<1x8x128xf32, #tpu.memory_space<vmem>>, %arg3: memref<1x8x128xf32, #tpu.memory_space<vmem>>, %arg4: memref<1x8x128xf32, #tpu.memory_space<vmem>>, %arg5: memref<1x8x128xf32, #tpu.memory_space<vmem>>) attributes {dimension_semantics = [#tpu.dimension_semantics<parallel>, #tpu.dimension_semantics<arbitrary>], iteration_bounds = array<i64: 2, 1>, scalar_prefetch = 0 : i64, scratch_operands = 0 : i64, tpu.core_type = #tpu.core_type<tc>, window_params = [{transform_indices = @transform_0, window_bounds = array<i64: 1, 8, 128>}, {transform_indices = @transform_1, window_bounds = array<i64: 1, 8, 128>}, {transform_indices = @transform_2, window_bounds = array<i64: 1, 8, 128>}, {transform_indices = @transform_3, window_bounds = array<i64: 1, 8, 128>}]} {
    %c0_i32 = arith.constant 0 : i32
    %0 = arith.cmpi eq, %arg1, %c0_i32 : i32
    %1 = arith.extui %0 : i1 to i32
    %c0_i32_0 = arith.constant 0 : i32
    %2 = arith.cmpi ne, %1, %c0_i32_0 : i32
    scf.if %2 {
      %cst_19 = arith.constant 0.000000e+00 : f32
      %27 = vector.broadcast %cst_19 : f32 to vector<1x8x128xf32>
      %c0_20 = arith.constant 0 : index
      %c0_21 = arith.constant 0 : index
      %c0_22 = arith.constant 0 : index
      %28 = vector.load %arg4[%c0_20, %c0_21, %c0_22] : memref<1x8x128xf32, #tpu.memory_space<vmem>>, vector<1x8x128xf32>
      tpu.vector_store %arg4[%c0_20, %c0_21, %c0_22], %27 {strides = array<i32>} : memref<1x8x128xf32, #tpu.memory_space<vmem>>, vector<1x8x128xf32>,
      %cst_23 = arith.constant 0.000000e+00 : f32
      %29 = vector.broadcast %cst_23 : f32 to vector<1x8x128xf32>
      %c0_24 = arith.constant 0 : index
      %c0_25 = arith.constant 0 : index
      %c0_26 = arith.constant 0 : index
      %30 = vector.load %arg5[%c0_24, %c0_25, %c0_26] : memref<1x8x128xf32, #tpu.memory_space<vmem>>, vector<1x8x128xf32>
      tpu.vector_store %arg5[%c0_24, %c0_25, %c0_26], %29 {strides = array<i32>} : memref<1x8x128xf32, #tpu.memory_space<vmem>>, vector<1x8x128xf32>,
    } else {
    }
    %c0 = arith.constant 0 : index
    %c0_1 = arith.constant 0 : index
    %c0_2 = arith.constant 0 : index
    %3 = vector.load %arg2[%c0, %c0_1, %c0_2] : memref<1x8x128xf32, #tpu.memory_space<vmem>>, vector<1x8x128xf32>
    %4 = vector.shape_cast %3 : vector<1x8x128xf32> to vector<8x128xf32>
    %c0_3 = arith.constant 0 : index
    %c0_4 = arith.constant 0 : index
    %c0_5 = arith.constant 0 : index
    %5 = vector.load %arg3[%c0_3, %c0_4, %c0_5] : memref<1x8x128xf32, #tpu.memory_space<vmem>>, vector<1x8x128xf32>
    %6 = vector.shape_cast %5 : vector<1x8x128xf32> to vector<8x128xf32>
    %c0_6 = arith.constant 0 : index
    %c0_7 = arith.constant 0 : index
    %c0_8 = arith.constant 0 : index
    %7 = vector.load %arg4[%c0_6, %c0_7, %c0_8] : memref<1x8x128xf32, #tpu.memory_space<vmem>>, vector<1x8x128xf32>
    %8 = vector.shape_cast %7 : vector<1x8x128xf32> to vector<8x128xf32>
    %9 = arith.mulf %4, %6 : vector<8x128xf32>
    %10 = vector.shape_cast %9 : vector<8x128xf32> to vector<1x8x128xf32>
    %cst = arith.constant dense<0.000000e+00> : vector<8x128xf32>
    %11 = vector.multi_reduction <add>, %10, %cst [0] : vector<1x8x128xf32> to vector<8x128xf32>
    %12 = arith.addf %8, %11 : vector<8x128xf32>
    %c0_9 = arith.constant 0 : index
    %c0_10 = arith.constant 0 : index
    %c0_11 = arith.constant 0 : index
    %13 = vector.load %arg4[%c0_9, %c0_10, %c0_11] : memref<1x8x128xf32, #tpu.memory_space<vmem>>, vector<1x8x128xf32>
    %14 = vector.shape_cast %13 : vector<1x8x128xf32> to vector<8x128xf32>
    %15 = vector.shape_cast %12 : vector<8x128xf32> to vector<1x8x128xf32>
    tpu.vector_store %arg4[%c0_9, %c0_10, %c0_11], %15 {strides = array<i32>} : memref<1x8x128xf32, #tpu.memory_space<vmem>>, vector<1x8x128xf32>,
    %c0_12 = arith.constant 0 : index
    %c0_13 = arith.constant 0 : index
    %c0_14 = arith.constant 0 : index
    %16 = vector.load %arg5[%c0_12, %c0_13, %c0_14] : memref<1x8x128xf32, #tpu.memory_space<vmem>>, vector<1x8x128xf32>
    %17 = vector.shape_cast %16 : vector<1x8x128xf32> to vector<8x128xf32>
    %18 = arith.mulf %4, %4 : vector<8x128xf32>
    %19 = arith.mulf %6, %6 : vector<8x128xf32>
    %20 = arith.addf %18, %19 : vector<8x128xf32>
    %21 = vector.shape_cast %20 : vector<8x128xf32> to vector<1x8x128xf32>
    %cst_15 = arith.constant dense<0.000000e+00> : vector<8x128xf32>
    %22 = vector.multi_reduction <add>, %21, %cst_15 [0] : vector<1x8x128xf32> to vector<8x128xf32>
    %23 = arith.addf %17, %22 : vector<8x128xf32>
    %c0_16 = arith.constant 0 : index
    %c0_17 = arith.constant 0 : index
    %c0_18 = arith.constant 0 : index
    %24 = vector.load %arg5[%c0_16, %c0_17, %c0_18] : memref<1x8x128xf32, #tpu.memory_space<vmem>>, vector<1x8x128xf32>
    %25 = vector.shape_cast %24 : vector<1x8x128xf32> to vector<8x128xf32>
    %26 = vector.shape_cast %23 : vector<8x128xf32> to vector<1x8x128xf32>
    tpu.vector_store %arg5[%c0_16, %c0_17, %c0_18], %26 {strides = array<i32>} : memref<1x8x128xf32, #tpu.memory_space<vmem>>, vector<1x8x128xf32>,
    return
  }
  func.func @transform_0(%arg0: i32, %arg1: i32) -> (i32, i32, i32) {
    %c0_i32 = arith.constant 0 : i32
    %c0_i32_0 = arith.constant 0 : i32
    return %arg0, %arg1, %c0_i32 : i32, i32, i32
  }
  func.func @transform_1(%arg0: i32, %arg1: i32) -> (i32, i32, i32) {
    %c0_i32 = arith.constant 0 : i32
    %c0_i32_0 = arith.constant 0 : i32
    return %arg0, %arg1, %c0_i32 : i32, i32, i32
  }
  func.func @transform_2(%arg0: i32, %arg1: i32) -> (i32, i32, i32) {
    %c0_i32 = arith.constant 0 : i32
    %c0_i32_0 = arith.constant 0 : i32
    %c0_i32_1 = arith.constant 0 : i32
    return %arg0, %c0_i32, %c0_i32_0 : i32, i32, i32
  }
  func.func @transform_3(%arg0: i32, %arg1: i32) -> (i32, i32, i32) {
    %c0_i32 = arith.constant 0 : i32
    %c0_i32_0 = arith.constant 0 : i32
    %c0_i32_1 = arith.constant 0 : i32
    return %arg0, %c0_i32, %c0_i32_0 : i32, i32, i32
  }
}

</mosaic_0001>

<bundles_post_ra>
// kernel: tpu_custom_call.1
= control target key start
LH: loop header
LB: loop body
LE: loop exit
PB: predicated region body
PF: predicated region fallthrough
CT: control target
= control target key end

     0   :  { %9 = vsyncpa [#allocation3], 0  ;;  %s899_s0 = inlined_call_operand.hbm [shape: f32[2,8,128], index: 0, kind: input, shape index: {}]   ;;  %s900_s1 = inlined_call_operand.hbm [shape: f32[2,8,128], index: 1, kind: input, shape index: {}]   ;;  %s901_s2 = inlined_call_operand.hbm [shape: f32[2,8,128], index: 2, kind: output, shape index: {0}]   ;;  %s902_s3 = inlined_call_operand.hbm [shape: f32[2,8,128], index: 3, kind: output, shape index: {1}]  }
   0x1   :  { %11 = vsyncpa [#allocation3 + $0x1], 0 }
   0x2   :  { %12 = vsyncpa [#allocation6], 0 }
   0x3   :  { %14 = vsyncpa [#allocation6 + $0x1], 0 }
   0x4   :  { %15 = vsyncpa [#allocation4], 0 }
   0x5   :  { %17 = vsyncpa [#allocation4 + $0x1], 0 }
   0x6   :  { %18 = vsyncpa [#allocation9], 0 }
   0x7   :  { %20 = vsyncpa [#allocation9 + $0x1], 0  ;;  %s739_s12 = smov 0   ;;  %s741_s13 = smov 0  }
   0x8   :  { %s743_s14 = smov 0   ;;  %s745_s15 = smov 0  }
   0x9   :  { %s747_s16 = smov 0   ;;  %s749_s17 = smov 0  }
   0xa LB: > { %s447_s18 = sadd.s32 4294967295, %s717_s17   ;;  %s448_s19 = sadd.s32 4294967294, %s717_s17   ;;  %s717_s17 = sphi %s749_s17, %s26_s17   ;;  %s713_s16 = sphi %s747_s16, %s911_s16   ;;  %s709_s15 = sphi %s745_s15, %s910_s15   ;;  %s705_s14 = sphi %s743_s14, %s909_s14   ;;  %s701_s13 = sphi %s741_s13, %s908_s13   ;;  %s697_s12 = sphi %s739_s12, %s907_s12  }
   0xb   : > { %s38_s20 = sadd.s32 1, %s713_s16  ;;  %s47_s21 = sadd.s32 1, %s705_s14 }
   0xc   : > { %p40_p0 = scmp.ge.s32.totalorder %s38_s20, 2  ;;  %p54_p1 = scmp.ne.s32.totalorder %s705_s14, %s701_s13 }
   0xd   : > { %p55_p2 = scmp.eq.s32.totalorder %s717_s17, 0  ;;  %p60_p3 = scmp.ne.s32.totalorder %s701_s13, %s697_s12 }
   0xe   : > { %s913_s20 = smov (%p40_p0, %s38_s20), 0  ;;  %p61_p5 = scmp.eq.s32.totalorder %s447_s18, 0 }
   0xf   : > { %p780_p4 = por %p55_p2, %p54_p1  ;;  %s42_s23 = ssub.s32 %s713_s16, %s913_s20 }
  0x10   : > { %p112_p6 = scmp.eq.s32.totalorder %s447_s18, 1  ;;  %p45_p7 = scmp.eq.s32.totalorder %s42_s23, 0 }
  0x11   : > { %p786_p8 = por %p61_p5, %p60_p3  ;;  %p118_p10 = scmp.eq.s32.totalorder %s448_s19, 1 }
  0x12   : > { %p790_p9 = por %p112_p6, %p54_p1  ;;  %p450_p12 = scmp.ge.s32.totalorder %s717_s17, 2 }
  0x13   : > { %s795_s26 = scalar_select %p45_p7, %s705_s14, %s47_s21  }
  0x14   : > { %p797_p11 = por %p118_p10, %p60_p3  ;;  %p488_p13 = scmp.lt.s32.totalorder %s717_s17, 2 }
  0x15   : > { %s164_s28 = sand.u32 1, %s705_s14   ;;  %s452_s30 = sshll.u32 %s713_s16, 3 }
  0x16   : > { %s451_s29 = sshll.u32 %s164_s28, 3  ;;  %s173_s6 = scalar_lea.hbm %s899_s0, %s452_s30 }
  0x17   : > { %s168_s7 = scalar_lea.vmem [#allocation2], %s451_s29  ;;  %s175_s9 = sshll.u32 %s173_s6, 4  ;;  %s176_s9 = int_to_ptr.hbm [resolvable:$true] %s175_s9 }
  0x18   : > { %s177_s8 = sshll.u32 %s168_s7, 4  ;;  %p475_p0 = pnand %p488_p13, %p780_p4  ;;  %s178_s8 = int_to_ptr.vmem [resolvable:$true] %s177_s8 }
  0x19   : > { %p455_p1 = scmp.ge.s32.totalorder %s717_s17, 1  ;;  %p202_p2 = scmp.lt.s32.totalorder %s717_s17, 3 }
  0x1a   : > { %s165_s10 = scalar_lea.sflag [#allocation3], %s164_s28  ;;  %s193_s19 = scalar_lea.hbm %s900_s1, %s452_s30 }
  0x1b   : > { %477 = dma.hbm_to_vmem [thread:$0]  (!%p475_p0), %s176_s9, 128, %s178_s8, %s165_s10  }
  0x1c   : > { %p203_p3 = pnand %p455_p1, %p202_p2  ;;  %s188_s21 = scalar_lea.vmem [#allocation5], %s451_s29 }
  0x1d   : > { %s197_s23 = sshll.u32 %s188_s21, 4  ;;  %s195_s4 = sshll.u32 %s193_s19, 4  ;;  %s198_s23 = int_to_ptr.vmem [resolvable:$true] %s197_s23  ;;  %s196_s4 = int_to_ptr.hbm [resolvable:$true] %s195_s4 }
  0x1e   : > { %s185_s5 = scalar_lea.sflag [#allocation6], %s164_s28  ;;  %206 = sbr.rel (%p203_p3) target bundleno = 67 (0x43), region = 28 }
  0x1f   : > { %480 = dma.hbm_to_vmem [thread:$0]  (!%p475_p0), %s196_s4, 128, %s198_s23, %s185_s5  }
  0x20   : > { %s816_s22 = sand.u32 (!%p203_p3), 1, %s701_s13  }
  0x21   : > { %s819_s6 = sshll.u32 (!%p203_p3), %s816_s22, 3  ;;  %s209_s7 = scalar_lea.sflag (!%p203_p3), [#allocation3], %s816_s22 }
  0x22   : > { %s212_s8 = scalar_lea.vmem (!%p203_p3), [#allocation2], %s819_s6 }
  0x23   : > { %680 = dma.done.wait (%p786_p8), %s209_s7, 128  }
  0x24   : > { %682 = vsyncadd (%p786_p8), %s209_s7, 4294967168  ;;  %s219_s28 = scalar_lea.sflag [#allocation6], %s816_s22  ;;  %s222_s29 = scalar_lea.vmem [#allocation5], %s819_s6 }
  0x25   : > { %684 = dma.done.wait (%p786_p8), %s219_s28, 128  }
  0x26   : > { %686 = vsyncadd (%p786_p8), %s219_s28, 4294967168  ;;  %s462_s30 = sshll.u32 %s709_s15, 3  ;;  %v262_v0 = vld [vmem:[%s212_s8] sm:$0xff]  ;;  %v263_v1 = vld [vmem:[%s222_s29] sm:$0xff]  ;;  %s248_s23 = scalar_lea.vmem [#allocation7], %s819_s6 }
  0x27   : > { %s292_s11 = scalar_lea.hbm %s901_s2, %s462_s30  ;;  %s306_s21 = scalar_lea.hbm %s902_s3, %s462_s30  ;;  %v265_v2 = vmul.f32 %v263_v1, %v262_v0  ;;  %v270_v3 = vmul.f32 %v262_v0, %v262_v0  ;;  %v271_v4 = vmul.f32 %v263_v1, %v263_v1 }
  0x28   : > { %s841_s4 = sshll.u32 %s248_s23, 4  ;;  %s296_s24 = sshll.u32 %s292_s11, 4  ;;  %s295_s4 = int_to_ptr.vmem [resolvable:$true] %s841_s4  ;;  %s297_s24 = int_to_ptr.hbm [resolvable:$true] %s296_s24 }
  0x29   : > { %s255_s15 = scalar_lea.vmem [#allocation8], %s819_s6  ;;  %s310_s7 = sshll.u32 %s306_s21, 4  ;;  %v272_v5 = vadd.f32 %v271_v4, %v270_v3  ;;  %268 = vst [vmem:[%s248_s23] sm:$0xff] %v265_v2  ;;  %s848_s7 = int_to_ptr.hbm [resolvable:$true] %s310_s7 }
  0x2a   : > { %s844_s5 = sshll.u32 %s255_s15, 4  ;;  %s277_s8 = scalar_lea.sflag [#allocation4], %s816_s22  ;;  %s309_s5 = int_to_ptr.vmem [resolvable:$true] %s844_s5 }
  0x2b   : > { %s613_s28 = sshra.s32 %s297_s24, 4  ;;  %s619_s9 = scalar_lea.hbm %s901_s2, 16  ;;  %s614_s28 = int_to_ptr.hbm [resolvable:$true] %s613_s28 }
  0x2c   : > { %s615_s29 = scalar_lea.hbm %s614_s28, 8  ;;  %p620_p7 = scmp.lt.s32.totalorder %s614_s28, %s901_s2 }
  0x2d   : > { %p616_p4 = scmp.ne.s32.totalorder %s614_s28, %s615_s29  ;;  %p621_p8 = scmp.lt.s32.totalorder %s619_s9, %s615_s29 }
  0x2f   : > { %p617_p5 = pnand %p616_p4, %p790_p9  ;;  %p622_p10 = por %p621_p8, %p620_p7 }
  0x31   : > { %p618_p6 = pneg %p617_p5 }
  0x33   : > { %p623_p13 = pnand %p622_p10, %p618_p6 }
  0x35   : > { %626 = shalt.err (!%p623_p13)
}
  0x36   : > { %470 = dma.vmem_to_hbm [thread:$0]  (%p790_p9), %s295_s4, 128, %s297_s24, %s277_s8   ;;  %275 = vst [vmem:[%s255_s15] sm:$0xff] %v272_v5 }
  0x37   : > { %s282_s18 = scalar_lea.sflag [#allocation9], %s816_s22  ;;  %s641_s19 = sshra.s32 %s848_s7, 4  ;;  %s642_s19 = int_to_ptr.hbm [resolvable:$true] %s641_s19 }
  0x38   : > { %s643_s21 = scalar_lea.hbm %s642_s19, 8  ;;  %s647_s29 = scalar_lea.hbm %s902_s3, 16 }
  0x39   : > { %p644_p0 = scmp.ne.s32.totalorder %s642_s19, %s643_s21  ;;  %p648_p3 = scmp.lt.s32.totalorder %s642_s19, %s902_s3 }
  0x3a   : > { %p649_p4 = scmp.lt.s32.totalorder %s647_s29, %s643_s21 }
  0x3b   : > { %p645_p1 = pnand %p644_p0, %p790_p9 }
  0x3c   : > { %p650_p5 = por %p649_p4, %p648_p3 }
  0x3d   : > { %p646_p2 = pneg %p645_p1 }
  0x3f   : > { %p651_p6 = pnand %p650_p5, %p646_p2 }
  0x41   : > { %654 = shalt.err (!%p651_p6)
}
  0x42   : > { %471 = dma.vmem_to_hbm [thread:$0]  (%p790_p9), %s309_s5, 128, %s848_s7, %s282_s18  }
  0x43 PF: > { %s322_s22 = sand.u32 1, %s697_s12   ;;  %p482_p7 = pnand %p450_p12, %p797_p11 }
  0x44   : > { %s323_s4 = scalar_lea.sflag [#allocation4], %s322_s22 }
  0x45   : > { %p483_p8 = pneg %p482_p7 }
  0x47   : > { %688 = dma.done.wait (%p483_p8), %s323_s4, 128  }
  0x48   : > { %690 = vsyncadd (%p483_p8), %s323_s4, 4294967168  ;;  %s333_s24 = scalar_lea.sflag [#allocation9], %s322_s22 }
  0x49   : > { %692 = dma.done.wait (%p483_p8), %s333_s24, 128  }
  0x4a   : > { %694 = vsyncadd (%p483_p8), %s333_s24, 4294967168  ;;  %s26_s17 = sadd.s32 1, %s717_s17   ;;  %s907_s12 = smov %s701_s13 }
  0x4b   : > { %p23_p10 = scmp.ge.s32.totalorder %s26_s17, 4   ;;  %s908_s13 = smov %s705_s14 }
  0x4c   : > { %s909_s14 = smov %s795_s26  ;;  %s910_s15 = smov %s713_s16 }
  0x4d   : > { %s911_s16 = smov %s913_s20  ;;  %25 = sbr.rel (!%p23_p10) target bundleno = 10 (0xa), region = 107 }
  0x52   :  { %339 = vsyncpa [#allocation3], 1 }
  0x53   :  { %341 = vsyncpa [#allocation3 + $0x1], 1 }
  0x54   :  { %342 = vsyncpa [#allocation6], 1 }
  0x55   :  { %344 = vsyncpa [#allocation6 + $0x1], 1 }
  0x56   :  { %345 = vsyncpa [#allocation4], 1 }
  0x57   :  { %347 = vsyncpa [#allocation4 + $0x1], 1 }
  0x58   :  { %348 = vsyncpa [#allocation9], 1 }
  0x59   :  { %350 = vsyncpa [#allocation9 + $0x1], 1 }

</bundles_post_ra>
